<compile_context>
chip_gen: v6e
topology: v6e:2x2x1
jax: 0.10.0
libtpu: 0.0.40
codegen_flags: <defaults>
</compile_context>

<pallas_src>
import numpy as np
import jax
import jax.numpy as jnp
from jax.experimental import pallas as pl
from jax.experimental.pallas import tpu as pltpu


_VMEM_LIMIT = 32 << 20        # safe on v5e (raise from 16 MiB default) and v7x (== default)
_WS_CAP = 10 << 20            # target pipelined working set per kernel


# ---------------------------------------------------------------------------
# tile-size helpers (exact divisors -> no pad / slice copies around kernels)
# ---------------------------------------------------------------------------
def _pick_row_tile(rows, bytes_per_row, *, align=16, ws_cap=_WS_CAP, row_cap=4096):
    """Largest multiple-of-`align` divisor of `rows`, double-buffer aware, and
    preferring >= 2 grid steps so megacore sharding / pipelining stay enabled."""
    cap = max(align, min(row_cap, ws_cap // max(2 * bytes_per_row, 1)))
    cap = min(cap, rows)

    def best(limit, step):
        t = (min(limit, rows) // step) * step
        while t >= step:
            if rows % t == 0:
                return t
            t -= step
        return None

    for limit in (min(cap, max(align, rows // 2)), cap):   # prefer >= 2 steps
        for step in (align, 8):
            t = best(limit, step)
            if t is not None:
                return t
    return rows                                            # single full block fallback


def _pick_lane_tile(n, bytes_per_lane, *, ws_cap=_WS_CAP, cap=16384):
    """Largest multiple-of-128 divisor of n, working-set aware, >= 2 steps preferred."""
    cap = max(128, min(cap, ws_cap // max(2 * bytes_per_lane, 1)))
    for limit in (min(cap, max(128, n // 2)), cap):
        t = (min(limit, n) // 128) * 128
        while t >= 128:
            if n % t == 0:
                return t
            t -= 128
    return n


def _pick_h_tile(H, W, C, bd_k):
    """Pick TH, the number of full image rows handled per fused-kernel tile.
    Requirements: TH | H, TH*W lane-aligned (%128 or == H*W), block-diagonal
    interpolation matrix (bd_k*TH, TH*W) small, working set under budget.
    Prefers >= 2 steps along H and lane tiles of ~<=4096."""
    HW = H * W

    def ok(th, lane_cap):
        p = th * W
        if p % 128 != 0 and p != HW:
            return False
        if p > lane_cap:
            return False
        if bd_k * th * p * 2 > (2 << 20):        # replicated block-diag (bf16) budget
            return False
        if 2 * C * p * (2 + 4) > _WS_CAP:        # 2x bf16 x-block + 2x f32 out-block
            return False
        return True

    divs = [d for d in range(1, H + 1) if H % d == 0]
    for lane_cap in (4096, 16384, 1 << 62):
        for need_steps in (True, False):
            cands = [d for d in divs
                     if ok(d, lane_cap) and (not need_steps or H // d >= 2 or HW <= 128)]
            if cands:
                return max(cands)
    return None                                   # caller falls back to unfused path


# ---------------------------------------------------------------------------
# Pallas kernel 1: row-tiled matmul  out(R, C) = A(R, K) @ B(K, C)
# (used for the one-pass width pooling; also for 'up' in the unfused fallback)
# ---------------------------------------------------------------------------
def _rowmm_kernel(a_ref, b_ref, o_ref):
    o_ref[...] = jnp.dot(a_ref[...], b_ref[...],
                         preferred_element_type=jnp.float32).astype(o_ref.dtype)


def rowmm(a, b, out_dtype=jnp.float32):
    R, K = a.shape
    Kb, C = b.shape
    assert K == Kb
    bpr = K * a.dtype.itemsize + C * jnp.dtype(out_dtype).itemsize
    align = 16 if a.dtype == jnp.dtype(jnp.bfloat16) else 8
    TR = _pick_row_tile(R, bpr, align=align)
    return pl.pallas_call(
        _rowmm_kernel,
        out_shape=jax.ShapeDtypeStruct((R, C), out_dtype),
        grid=(R // TR,),
        in_specs=[pl.BlockSpec((TR, K), lambda r: (r, 0)),
                  pl.BlockSpec((K, C), lambda r: (0, 0))],
        out_specs=pl.BlockSpec((TR, C), lambda r: (r, 0)),
        compiler_params=pltpu.CompilerParams(
            dimension_semantics=("parallel",),
            vmem_limit_bytes=_VMEM_LIMIT),
    )(a, b)


# ---------------------------------------------------------------------------
# Pallas kernel 2 (FUSED): final 1x1 conv + column interpolation + bias
#   out[n, :, tile] = W_x(C,C) @ x[n, :, tile]  +  rprj[n, tile](C, TH*13) @ BD(TH*13, TH*W)
# Both matmuls produce (C, TH*W) with channels in sublanes and pixels lane-dense,
# so the epilogue is a single add -- no relayout, no HBM round trip for 'up'.
# ---------------------------------------------------------------------------
def _fused_out_kernel(w_ref, bd_ref, x_ref, rprj_ref, o_ref):
    conv = jnp.dot(w_ref[...], x_ref[...], preferred_element_type=jnp.float32)     # (C, P)
    up = jnp.dot(rprj_ref[...], bd_ref[...], preferred_element_type=jnp.float32)   # (C, P)
    o_ref[...] = (conv + up).astype(o_ref.dtype)


def fused_conv_upsample(w_x, bd, x_cm, rprj_r, TH, W):
    N, C, HW = x_cm.shape
    P = TH * W
    HB = HW // P
    Kb = bd.shape[0]                     # TH * 13
    return pl.pallas_call(
        _fused_out_kernel,
        out_shape=jax.ShapeDtypeStruct((N, C, HW), jnp.float32),
        grid=(N, HB),
        in_specs=[pl.BlockSpec((C, C), lambda n, t: (0, 0)),
                  pl.BlockSpec((Kb, P), lambda n, t: (0, 0)),
                  pl.BlockSpec((None, C, P), lambda n, t: (n, 0, t)),
                  pl.BlockSpec((None, None, C, Kb), lambda n, t: (n, t, 0, 0))],
        out_specs=pl.BlockSpec((None, C, P), lambda n, t: (n, 0, t)),
        compiler_params=pltpu.CompilerParams(
            dimension_semantics=("parallel", "parallel"),
            vmem_limit_bytes=_VMEM_LIMIT),
    )(w_x, bd, x_cm, rprj_r)


# ---------------------------------------------------------------------------
# fallback kernel (only for awkward H/W): final conv + add of a bf16 'up' stream
# ---------------------------------------------------------------------------
def _conv1x1_add_kernel(w_ref, x_ref, up_ref, o_ref):
    acc = jnp.dot(w_ref[...], x_ref[...], preferred_element_type=jnp.float32)
    o_ref[...] = (acc + up_ref[...].astype(jnp.float32)).astype(o_ref.dtype)


def conv1x1_add(w, x_cm, up_cm):
    N, C, HW = x_cm.shape
    Cout = w.shape[0]
    TP = _pick_lane_tile(HW, C * 2 + Cout * 2 + Cout * 4)
    return pl.pallas_call(
        _conv1x1_add_kernel,
        out_shape=jax.ShapeDtypeStruct((N, Cout, HW), jnp.float32),
        grid=(N, HW // TP),
        in_specs=[pl.BlockSpec((Cout, C), lambda n, p: (0, 0)),
                  pl.BlockSpec((None, C, TP), lambda n, p: (n, 0, p)),
                  pl.BlockSpec((None, Cout, TP), lambda n, p: (n, 0, p))],
        out_specs=pl.BlockSpec((None, Cout, TP), lambda n, p: (n, 0, p)),
        compiler_params=pltpu.CompilerParams(
            dimension_semantics=("parallel", "parallel"),
            vmem_limit_bytes=_VMEM_LIMIT),
    )(w, x_cm, up_cm)


# ---------------------------------------------------------------------------
# static (trace-time) adaptive-pool / bilinear-interp matrices (PyTorch exact)
# ---------------------------------------------------------------------------
def _adaptive_pool_matrix(in_size, out_size):
    """(in_size, out_size); column j averages PyTorch's adaptive bin j."""
    m = np.zeros((in_size, out_size), np.float32)
    for j in range(out_size):
        start = (j * in_size) // out_size
        end = -((-(j + 1) * in_size) // out_size)   # ceil
        m[start:end, j] = 1.0 / (end - start)
    return m


def _bilinear_matrix(out_size, in_size):
    """(out_size, in_size); F.interpolate bilinear, align_corners=False."""
    m = np.zeros((out_size, in_size), np.float32)
    if in_size == 1:
        m[:, 0] = 1.0
        return m
    scale = in_size / out_size
    for o in range(out_size):
        src = max((o + 0.5) * scale - 0.5, 0.0)
        i0 = min(int(np.floor(src)), in_size - 1)
        i1 = min(i0 + 1, in_size - 1)
        w1 = src - i0
        m[o, i0] += 1.0 - w1
        m[o, i1] += w1
    return m


# ---------------------------------------------------------------------------
# full PSP forward (single top-level jit; tiny s x s branch math is JAX glue)
# ---------------------------------------------------------------------------
def make_psp_forward(pool_scales=(1, 2, 3, 6)):
    @jax.jit
    def forward(x, psp_w, w_last, b_last):
        N, C, H, W = x.shape                 # C == num_classes
        HW = H * W
        bf16 = jnp.bfloat16
        S = sum(pool_scales)
        K = S + 1                            # +1 folded-bias column

        # ---- trace-time constants (numpy; become literals, no runtime cost) ----
        pw = [_adaptive_pool_matrix(W, s) for s in pool_scales]   # (W, s)
        ph = [_adaptive_pool_matrix(H, s) for s in pool_scales]   # (H, s)
        ry = [_bilinear_matrix(H, s) for s in pool_scales]        # (H, s)
        rx = [_bilinear_matrix(W, s) for s in pool_scales]        # (W, s)
        pw_cat = np.concatenate(pw, axis=1)                                   # (W, S)
        rx_cat = np.concatenate(rx + [np.ones((W, 1), np.float32)], axis=1)   # (W, K)

        x_bf = x.astype(bf16)                # cast once; shared by both Pallas passes

        # -- pass 1: width-pooled partials for all pyramid scales (one read of x)
        t = rowmm(x_bf.reshape(N * C * H, W), jnp.asarray(pw_cat, bf16))      # (N*C*H, S)
        t = t.reshape(N, C, H, S)

        # -- tiny per-branch work at s x s resolution (plain JAX glue, negligible)
        w_x = w_last[:, :C]                                       # (C, C)
        dim = psp_w[0].shape[0]
        cols = []
        off = 0
        for k, s in enumerate(pool_scales):
            t_s = t[..., off:off + s]                             # (N, C, H, s)
            off += s
            pooled = jnp.einsum('hi,nchj->ncij', jnp.asarray(ph[k]), t_s)     # (N,C,s,s)
            branch = jax.nn.relu(jnp.einsum('dc,ncij->ndij', psp_w[k], pooled))
            w_s = w_last[:, C + k * dim: C + (k + 1) * dim]       # (C, dim) conv_last slice
            # project to output channels + row interpolation, still at low width s
            cols.append(jnp.einsum('hi,cd,ndij->nchj', jnp.asarray(ry[k]), w_s, branch))
        bias_col = jnp.broadcast_to(b_last[None, :, None, None], (N, C, H, 1))
        rprj = jnp.concatenate(cols + [bias_col], axis=-1)        # (N, C, H, K)

        x_cm = x_bf.reshape(N, C, HW)
        TH = _pick_h_tile(H, W, C, K)
        if TH is not None:
            P = TH * W
            HB = H // TH
            # block-diagonal column-interp matrix: bd[j*K+k, j*W+w] = rx_cat[w, k]
            bd = np.zeros((TH * K, P), np.float32)
            for j in range(TH):
                bd[j * K:(j + 1) * K, j * W:(j + 1) * W] = rx_cat.T
            # rearrange rprj so each fused tile reads one contiguous (C, TH*K) slab
            rprj_r = (rprj.reshape(N, C, HB, TH, K)
                          .transpose(0, 2, 1, 3, 4)
                          .reshape(N, HB, C, TH * K)).astype(bf16)
            # -- pass 2 (fused): final 1x1 conv + upsample + bias, no 'up' in HBM
            out = fused_conv_upsample(w_x.astype(bf16), jnp.asarray(bd, bf16),
                                      x_cm, rprj_r, TH, W)
        else:
            # TODO(synk): masked-last-tile fused path; meanwhile keep 'up' in bf16 so the
            # unfused fallback still cuts the intermediate stream in half vs f32.
            up = rowmm(rprj.reshape(N * C * H, K).astype(bf16),
                       jnp.asarray(rx_cat.T, bf16), out_dtype=bf16)           # (N*C*H, W)
            out = conv1x1_add(w_x.astype(bf16), x_cm, up.reshape(N, C, HW))

        return out.reshape(N, C, H, W)

    return forward


# ---------------------------------------------------------------------------
# direct (unfused, f32) reference for validation
# ---------------------------------------------------------------------------
def psp_reference(x, psp_w, w_last, b_last, pool_scales=(1, 2, 3, 6)):
    N, C, H, W = x.shape
    feats = [x]
    for k, s in enumerate(pool_scales):
        ph = jnp.asarray(_adaptive_pool_matrix(H, s))
        pw = jnp.asarray(_adaptive_pool_matrix(W, s))
        pooled = jnp.einsum('nchw,hi,wj->ncij', x, ph, pw)
        branch = jax.nn.relu(jnp.einsum('dc,ncij->ndij', psp_w[k], pooled))
        ryk = jnp.asarray(_bilinear_matrix(H, s))
        rxk = jnp.asarray(_bilinear_matrix(W, s))
        feats.append(jnp.einsum('ndij,hi,wj->ndhw', branch, ryk, rxk))
    cat = jnp.concatenate(feats, axis=1)
    return jnp.einsum('cd,ndhw->nchw', w_last, cat) + b_last[None, :, None, None]


# ---------------------------------------------------------------------------
# deterministic synthetic parameters (shapes from the module's __init__)
# ---------------------------------------------------------------------------
def init_params(key, num_classes=19, dim=16, pool_scales=(1, 2, 3, 6)):
    keys = jax.random.split(key, len(pool_scales) + 2)
    psp_w = tuple(
        jax.random.normal(keys[k], (dim, num_classes), jnp.float32)
        * np.sqrt(2.0 / num_classes)
        for k in range(len(pool_scales)))
    cin = num_classes + len(pool_scales) * dim
    w_last = jax.random.normal(keys[-2], (num_classes, cin), jnp.float32) * np.sqrt(1.0 / cin)
    b_last = 0.02 * jax.random.normal(keys[-1], (num_classes,), jnp.float32)
    return psp_w, w_last, b_last


if __name__ == "__main__":
    key = jax.random.PRNGKey(0)
    # num_classes=19 input channels is forced by the module; small spatial size.
    N, C, H, W = 2, 19, 16, 32
    x = jax.random.normal(jax.random.fold_in(key, 1), (N, C, H, W), jnp.float32)
    psp_w, w_last, b_last = init_params(jax.random.fold_in(key, 2), num_classes=C)

    forward = make_psp_forward()
    out = jax.block_until_ready(forward(x, psp_w, w_last, b_last))

    assert out.shape == (N, C, H, W), out.shape
    assert bool(jnp.all(jnp.isfinite(out)))

    # validate the fused / bf16 Pallas path against a direct f32 computation
    ref = psp_reference(x, psp_w, w_last, b_last)
    err = float(jnp.max(jnp.abs(out - ref)))
    scale = float(jnp.max(jnp.abs(ref))) + 1e-6
    assert err < 5e-2 * scale + 5e-2, (err, scale)

    print("KERNEL_OK")
</pallas_src>

<mosaic_0001>
module attributes {stable_mosaic.version = 11 : i64} {
  func.func @_rowmm_kernel(%arg0: i32, %arg1: memref<304x32xbf16, #tpu.memory_space<vmem>>, %arg2: memref<32x12xbf16, #tpu.memory_space<vmem>>, %arg3: memref<304x12xf32, #tpu.memory_space<vmem>>) attributes {dimension_semantics = [#tpu.dimension_semantics<parallel>], iteration_bounds = array<i64: 2>, scalar_prefetch = 0 : i64, scratch_operands = 0 : i64, tpu.core_type = #tpu.core_type<tc>, window_params = [{transform_indices = @transform_0, window_bounds = array<i64: 304, 32>}, {pipeline_mode = #tpu.pipeline_mode<synchronous>, transform_indices = @transform_1, window_bounds = array<i64: 32, 12>}, {transform_indices = @transform_2, window_bounds = array<i64: 304, 12>}]} {
    %c0 = arith.constant 0 : index
    %c0_0 = arith.constant 0 : index
    %0 = vector.load %arg1[%c0, %c0_0] : memref<304x32xbf16, #tpu.memory_space<vmem>>, vector<304x32xbf16>
    %c0_1 = arith.constant 0 : index
    %c0_2 = arith.constant 0 : index
    %1 = vector.load %arg2[%c0_1, %c0_2] : memref<32x12xbf16, #tpu.memory_space<vmem>>, vector<32x12xbf16>
    %cst = arith.constant dense<0.000000e+00> : vector<304x12xf32>
    %2 = tpu.matmul %0, %1, %cst {dimension_numbers = #tpu.dot_dimension_numbers<[1], [0], [0], [1], [0, 0, 1, 1], [], []>} : vector<304x32xbf16>, vector<32x12xbf16>, vector<304x12xf32> -> vector<304x12xf32>
    %c0_3 = arith.constant 0 : index
    %c0_4 = arith.constant 0 : index
    %3 = vector.load %arg3[%c0_3, %c0_4] : memref<304x12xf32, #tpu.memory_space<vmem>>, vector<304x12xf32>
    tpu.vector_store %arg3[%c0_3, %c0_4], %2 {strides = array<i32>} : memref<304x12xf32, #tpu.memory_space<vmem>>, vector<304x12xf32>,
    return
  }
  func.func @transform_0(%arg0: i32) -> (i32, i32) {
    %c0_i32 = arith.constant 0 : i32
    %c0_i32_0 = arith.constant 0 : i32
    return %arg0, %c0_i32 : i32, i32
  }
  func.func @transform_1(%arg0: i32) -> (i32, i32) {
    %c0_i32 = arith.constant 0 : i32
    %c0_i32_0 = arith.constant 0 : i32
    %c0_i32_1 = arith.constant 0 : i32
    return %c0_i32, %c0_i32_0 : i32, i32
  }
  func.func @transform_2(%arg0: i32) -> (i32, i32) {
    %c0_i32 = arith.constant 0 : i32
    %c0_i32_0 = arith.constant 0 : i32
    return %arg0, %c0_i32 : i32, i32
  }
}

module attributes {stable_mosaic.version = 11 : i64} {
  func.func @_fused_out_kernel(%arg0: i32, %arg1: i32, %arg2: memref<19x19xbf16, #tpu.memory_space<vmem>>, %arg3: memref<104x256xbf16, #tpu.memory_space<vmem>>, %arg4: memref<1x19x256xbf16, #tpu.memory_space<vmem>>, %arg5: memref<1x1x19x104xbf16, #tpu.memory_space<vmem>>, %arg6: memref<1x19x256xf32, #tpu.memory_space<vmem>>) attributes {dimension_semantics = [#tpu.dimension_semantics<parallel>, #tpu.dimension_semantics<parallel>], iteration_bounds = array<i64: 2, 2>, scalar_prefetch = 0 : i64, scratch_operands = 0 : i64, tpu.core_type = #tpu.core_type<tc>, window_params = [{pipeline_mode = #tpu.pipeline_mode<synchronous>, transform_indices = @transform_0, window_bounds = array<i64: 19, 19>}, {pipeline_mode = #tpu.pipeline_mode<synchronous>, transform_indices = @transform_1, window_bounds = array<i64: 104, 256>}, {transform_indices = @transform_2, window_bounds = array<i64: 1, 19, 256>}, {transform_indices = @transform_3, window_bounds = array<i64: 1, 1, 19, 104>}, {transform_indices = @transform_4, window_bounds = array<i64: 1, 19, 256>}]} {
    %c0 = arith.constant 0 : index
    %c0_0 = arith.constant 0 : index
    %0 = vector.load %arg2[%c0, %c0_0] : memref<19x19xbf16, #tpu.memory_space<vmem>>, vector<19x19xbf16>
    %c0_1 = arith.constant 0 : index
    %c0_2 = arith.constant 0 : index
    %c0_3 = arith.constant 0 : index
    %1 = vector.load %arg4[%c0_1, %c0_2, %c0_3] : memref<1x19x256xbf16, #tpu.memory_space<vmem>>, vector<1x19x256xbf16>
    %2 = vector.shape_cast %1 : vector<1x19x256xbf16> to vector<19x256xbf16>
    %cst = arith.constant dense<0.000000e+00> : vector<19x256xf32>
    %3 = tpu.matmul %0, %2, %cst {dimension_numbers = #tpu.dot_dimension_numbers<[1], [0], [0], [1], [0, 0, 1, 1], [], []>} : vector<19x19xbf16>, vector<19x256xbf16>, vector<19x256xf32> -> vector<19x256xf32>
    %c0_4 = arith.constant 0 : index
    %c0_5 = arith.constant 0 : index
    %c0_6 = arith.constant 0 : index
    %c0_7 = arith.constant 0 : index
    %4 = vector.load %arg5[%c0_4, %c0_5, %c0_6, %c0_7] : memref<1x1x19x104xbf16, #tpu.memory_space<vmem>>, vector<1x1x19x104xbf16>
    %5 = vector.shape_cast %4 : vector<1x1x19x104xbf16> to vector<19x104xbf16>
    %c0_8 = arith.constant 0 : index
    %c0_9 = arith.constant 0 : index
    %6 = vector.load %arg3[%c0_8, %c0_9] : memref<104x256xbf16, #tpu.memory_space<vmem>>, vector<104x256xbf16>
    %cst_10 = arith.constant dense<0.000000e+00> : vector<19x256xf32>
    %7 = tpu.matmul %5, %6, %cst_10 {dimension_numbers = #tpu.dot_dimension_numbers<[1], [0], [0], [1], [0, 0, 1, 1], [], []>} : vector<19x104xbf16>, vector<104x256xbf16>, vector<19x256xf32> -> vector<19x256xf32>
    %8 = arith.addf %3, %7 : vector<19x256xf32>
    %c0_11 = arith.constant 0 : index
    %c0_12 = arith.constant 0 : index
    %c0_13 = arith.constant 0 : index
    %9 = vector.load %arg6[%c0_11, %c0_12, %c0_13] : memref<1x19x256xf32, #tpu.memory_space<vmem>>, vector<1x19x256xf32>
    %10 = vector.shape_cast %9 : vector<1x19x256xf32> to vector<19x256xf32>
    %11 = vector.shape_cast %8 : vector<19x256xf32> to vector<1x19x256xf32>
    tpu.vector_store %arg6[%c0_11, %c0_12, %c0_13], %11 {strides = array<i32>} : memref<1x19x256xf32, #tpu.memory_space<vmem>>, vector<1x19x256xf32>,
    return
  }
  func.func @transform_0(%arg0: i32, %arg1: i32) -> (i32, i32) {
    %c0_i32 = arith.constant 0 : i32
    %c0_i32_0 = arith.constant 0 : i32
    %c0_i32_1 = arith.constant 0 : i32
    return %c0_i32, %c0_i32_0 : i32, i32
  }
  func.func @transform_1(%arg0: i32, %arg1: i32) -> (i32, i32) {
    %c0_i32 = arith.constant 0 : i32
    %c0_i32_0 = arith.constant 0 : i32
    %c0_i32_1 = arith.constant 0 : i32
    return %c0_i32, %c0_i32_0 : i32, i32
  }
  func.func @transform_2(%arg0: i32, %arg1: i32) -> (i32, i32, i32) {
    %c0_i32 = arith.constant 0 : i32
    %c0_i32_0 = arith.constant 0 : i32
    return %arg0, %c0_i32, %arg1 : i32, i32, i32
  }
  func.func @transform_3(%arg0: i32, %arg1: i32) -> (i32, i32, i32, i32) {
    %c0_i32 = arith.constant 0 : i32
    %c0_i32_0 = arith.constant 0 : i32
    %c0_i32_1 = arith.constant 0 : i32
    return %arg0, %arg1, %c0_i32, %c0_i32_0 : i32, i32, i32, i32
  }
  func.func @transform_4(%arg0: i32, %arg1: i32) -> (i32, i32, i32) {
    %c0_i32 = arith.constant 0 : i32
    %c0_i32_0 = arith.constant 0 : i32
    return %arg0, %c0_i32, %arg1 : i32, i32, i32
  }
}

</mosaic_0001>

<bundles_post_ra>
// kernel: forward.2
= control target key start
LH: loop header
LB: loop body
LE: loop exit
PB: predicated region body
PF: predicated region fallthrough
CT: control target
= control target key end

     0   :  { %s845_s9 = smov 0   ;;  %s1032_s0 = inlined_call_operand.vmem [shape: bf16[608,32], index: 0, kind: input, shape index: {}]   ;;  %s1033_s1 = inlined_call_operand.vmem [shape: bf16[32,12], index: 1, kind: input, shape index: {}]   ;;  %s1034_s2 = inlined_call_operand.vmem [shape: f32[608,12], index: 2, kind: output, shape index: {}]  }
   0x1 LB: > { %s635_s10 = sadd.s32 4294967295, %s826_s9   ;;  %p639_p0 = scmp.ge.s32.totalorder %s826_s9, 1  ;;  %s826_s9 = sphi %s845_s9, %s12_s9  }
   0x2   : > { %p113_p1 = scmp.lt.s32.totalorder %s826_s9, 3 }
   0x4   : > { %p114_p2 = pnand %p639_p0, %p113_p1 }
   0x5   : > { %s135_s15 = smul.u32 (!%p114_p2), 38, %s635_s10 }
   0x6   : > { %117 = sbr.rel (%p114_p2) target bundleno = 291 (0x123), region = 28 }
   0x7   : > { %p136_p3 = scmp.lt.s32.totalorder (!%p114_p2), %s135_s15, 75 }
   0xb   : > { %v799_v0 = vld [vmem:[%s1033_s1 + $0x8] sm:$0xff]   ;;  %v828_v1 = vmov 0.0   ;;  %v800_v2 = vld [vmem:[%s1033_s1] sm:$0xff]   ;;  %vm829_vm0 = vmmov 0   ;;  %s1036_s15 = smov (!%p136_p3, %s135_s15), 75  ;;  %vm297_vm1 = vcmask 261120  }
   0xc   : > { %705 = vmatprep.subr.bf16.mxu0 %v828_v1  ;;  %785 = vmatprep.subr.bf16.mxu1 %v828_v1  ;;  %s640_s16 = sshll.u32 %s1036_s15, 2  ;;  %s641_s20 = sshll.u32 %s1036_s15, 3  ;;  %vm540_vm2 = vcmask 97280  }
   0xd   : > { %706 = vmatpush3.bf16.msra.mxu0 %v799_v0  ;;  %787 = vmatpush3.bf16.msra.mxu1 %v799_v0  ;;  %s873_s19 = scalar_lea.vmem %s1032_s0, %s640_s16  ;;  %s951_s23 = scalar_lea.vmem %s1034_s2, %s641_s20 }
   0xe   : > { %707 = vmatprep.subr.bf16.mxu0 %v828_v1  ;;  %786 = vmatprep.subr.bf16.mxu1 %v828_v1  ;;  %v801_v3 = vld [vmem:[%s873_s19] sm:$0xff]   ;;  %v802_v4 = vld [vmem:[%s873_s19 + $0x50] sm:$0xff]   ;;  %v803_v5 = vld [vmem:[%s873_s19 + $0x8] sm:$0xff]  }
   0xf   : > { %709 = vmatprep.mubr.msk.bf16.mxu0 %vm829_vm0, %v828_v1  ;;  %749 = vmatprep.mubr.msk.bf16.mxu1 %vm829_vm0, %v828_v1  ;;  %v804_v6 = vld [vmem:[%s873_s19 + $0x58] sm:$0xff]   ;;  %v805_v7 = vld [vmem:[%s873_s19 + $0x10] sm:$0xff]   ;;  %v806_v8 = vld [vmem:[%s873_s19 + $0x60] sm:$0xff]  }
  0x10   : > { %v807_v9 = vld [vmem:[%s873_s19 + $0x18] sm:$0xff]   ;;  %v808_v10 = vld [vmem:[%s873_s19 + $0x68] sm:$0xff]   ;;  %v809_v11 = vld [vmem:[%s873_s19 + $0x20] sm:$0xff]  }
  0x11   : > { %708 = vmatpush3.bf16.msra.mxu0 %v800_v2  ;;  %788 = vmatpush3.bf16.msra.mxu1 %v800_v2  ;;  %v810_v12 = vld [vmem:[%s873_s19 + $0x70] sm:$0xff]   ;;  %v811_v13 = vld [vmem:[%s873_s19 + $0x28] sm:$0xff]   ;;  %v812_v14 = vld [vmem:[%s873_s19 + $0x78] sm:$0xff]  }
  0x12   : > { %v813_v15 = vld [vmem:[%s873_s19 + $0x30] sm:$0xff]   ;;  %v814_v16 = vld [vmem:[%s873_s19 + $0x80] sm:$0xff]   ;;  %v815_v17 = vld [vmem:[%s873_s19 + $0x38] sm:$0xff]  }
  0x13   : > { %v816_v18 = vld [vmem:[%s873_s19 + $0x88] sm:$0xff]   ;;  %v817_v19 = vld [vmem:[%s873_s19 + $0x40] sm:$0xff]   ;;  %v818_v20 = vld [vmem:[%s873_s19 + $0x90] sm:$0xff]  }
  0x14   : > { %710 = vmatmul.mubr.msk.bf16.vlgmr.msra.gmra.mxu0 %vm297_vm1, %v801_v3  ;;  %750 = vmatmul.mubr.msk.bf16.vlgmr.msra.gmra.mxu1 %vm297_vm1, %v802_v4  ;;  %v819_v21 = vld [vmem:[%s873_s19 + $0x48] sm:$0xff]  }
  0x15   : > { %713 = vmatprep.mubr.msk.bf16.mxu0 %vm829_vm0, %v828_v1  ;;  %753 = vmatprep.mubr.msk.bf16.mxu1 %vm829_vm0, %v828_v1 }
  0x1c   : > { %714 = vmatmul.mubr.msk.bf16.gmra.mxu0 %vm297_vm1, %v803_v5  ;;  %754 = vmatmul.mubr.msk.bf16.gmra.mxu1 %vm297_vm1, %v804_v6 }
  0x1d   : > { %717 = vmatprep.mubr.msk.bf16.mxu0 %vm829_vm0, %v828_v1  ;;  %757 = vmatprep.mubr.msk.bf16.mxu1 %vm829_vm0, %v828_v1 }
  0x24   : > { %718 = vmatmul.mubr.msk.bf16.gmra.mxu0 %vm297_vm1, %v805_v7  ;;  %758 = vmatmul.mubr.msk.bf16.gmra.mxu1 %vm297_vm1, %v806_v8 }
  0x25   : > { %721 = vmatprep.mubr.msk.bf16.mxu0 %vm829_vm0, %v828_v1  ;;  %761 = vmatprep.mubr.msk.bf16.mxu1 %vm829_vm0, %v828_v1 }
  0x2c   : > { %722 = vmatmul.mubr.msk.bf16.gmra.mxu0 %vm297_vm1, %v807_v9  ;;  %762 = vmatmul.mubr.msk.bf16.gmra.mxu1 %vm297_vm1, %v808_v10 }
  0x2d   : > { %725 = vmatprep.mubr.msk.bf16.mxu0 %vm829_vm0, %v828_v1  ;;  %765 = vmatprep.mubr.msk.bf16.mxu1 %vm829_vm0, %v828_v1 }
  0x34   : > { %726 = vmatmul.mubr.msk.bf16.gmra.mxu0 %vm297_vm1, %v809_v11  ;;  %766 = vmatmul.mubr.msk.bf16.gmra.mxu1 %vm297_vm1, %v810_v12 }
  0x35   : > { %729 = vmatprep.mubr.msk.bf16.mxu0 %vm829_vm0, %v828_v1  ;;  %769 = vmatprep.mubr.msk.bf16.mxu1 %vm829_vm0, %v828_v1 }
  0x3c   : > { %730 = vmatmul.mubr.msk.bf16.gmra.mxu0 %vm297_vm1, %v811_v13  ;;  %770 = vmatmul.mubr.msk.bf16.gmra.mxu1 %vm297_vm1, %v812_v14 }
  0x3d   : > { %733 = vmatprep.mubr.msk.bf16.mxu0 %vm829_vm0, %v828_v1  ;;  %773 = vmatprep.mubr.msk.bf16.mxu1 %vm829_vm0, %v828_v1 }
  0x44   : > { %734 = vmatmul.mubr.msk.bf16.gmra.mxu0 %vm297_vm1, %v813_v15  ;;  %774 = vmatmul.mubr.msk.bf16.gmra.mxu1 %vm297_vm1, %v814_v16 }
  0x45   : > { %737 = vmatprep.mubr.msk.bf16.mxu0 %vm829_vm0, %v828_v1  ;;  %777 = vmatprep.mubr.msk.bf16.mxu1 %vm829_vm0, %v828_v1 }
  0x4c   : > { %738 = vmatmul.mubr.msk.bf16.gmra.mxu0 %vm297_vm1, %v815_v17  ;;  %778 = vmatmul.mubr.msk.bf16.gmra.mxu1 %vm297_vm1, %v816_v18 }
  0x4d   : > { %741 = vmatprep.mubr.msk.bf16.mxu0 %vm829_vm0, %v828_v1  ;;  %781 = vmatprep.mubr.msk.bf16.mxu1 %vm829_vm0, %v828_v1 }
  0x54   : > { %742 = vmatmul.mubr.msk.bf16.gmra.mxu0 %vm297_vm1, %v817_v19  ;;  %782 = vmatmul.mubr.msk.bf16.gmra.mxu1 %vm297_vm1, %v818_v20 }
  0x55   : > { %745 = vmatprep.mubr.msk.bf16.mxu0 %vm829_vm0, %v828_v1 }
  0x5c   : > { %746 = vmatmul.mubr.msk.bf16.gmra.mxu0 %vm297_vm1, %v819_v21 }
  0xd4   : > { %v389_v22 = vpop.f32.mrf.mxu0  ;;  %v469_v23 = vpop.f32.mrf.mxu1 }
  0xd5   : > { %541 = vst.msk [vmem:[%s951_s23] sm:$0xff] %vm540_vm2, %v389_v22  ;;  %561 = vst.msk [vmem:[%s951_s23 + $0xa0] sm:$0xff] %vm540_vm2, %v469_v23 }
  0xd6   : > { %v711_v24 = vpop.f32.mrf.mxu0  ;;  %v751_v25 = vpop.f32.mrf.mxu1 }
  0xd8   : > { %v392_v26 = vpop.f32.mrf.mxu0  ;;  %v472_v27 = vpop.f32.mrf.mxu1 }
  0xd9   : > { %542 = vst.msk [vmem:[%s951_s23 + $0x8] sm:$0xff] %vm540_vm2, %v392_v26  ;;  %562 = vst.msk [vmem:[%s951_s23 + $0xa8] sm:$0xff] %vm540_vm2, %v472_v27 }
  0xda   : > { %v712_v28 = vpop.f32.mrf.mxu0  ;;  %v752_v29 = vpop.f32.mrf.mxu1 }
  0xdc   : > { %v397_v30 = vpop.f32.mrf.mxu0  ;;  %v477_v31 = vpop.f32.mrf.mxu1 }
  0xdd   : > { %543 = vst.msk [vmem:[%s951_s23 + $0x10] sm:$0xff] %vm540_vm2, %v397_v30  ;;  %563 = vst.msk [vmem:[%s951_s23 + $0xb0] sm:$0xff] %vm540_vm2, %v477_v31 }
  0xde   : > { %v715_v32 = vpop.f32.mrf.mxu0  ;;  %v755_v33 = vpop.f32.mrf.mxu1 }
  0xe0   : > { %v400_v34 = vpop.f32.mrf.mxu0  ;;  %v480_v35 = vpop.f32.mrf.mxu1 }
  0xe1   : > { %544 = vst.msk [vmem:[%s951_s23 + $0x18] sm:$0xff] %vm540_vm2, %v400_v34  ;;  %564 = vst.msk [vmem:[%s951_s23 + $0xb8] sm:$0xff] %vm540_vm2, %v480_v35 }
  0xe2   : > { %v716_v36 = vpop.f32.mrf.mxu0  ;;  %v756_v37 = vpop.f32.mrf.mxu1 }
  0xe4   : > { %v405_v38 = vpop.f32.mrf.mxu0  ;;  %v485_v39 = vpop.f32.mrf.mxu1 }
  0xe5   : > { %545 = vst.msk [vmem:[%s951_s23 + $0x20] sm:$0xff] %vm540_vm2, %v405_v38  ;;  %565 = vst.msk [vmem:[%s951_s23 + $0xc0] sm:$0xff] %vm540_vm2, %v485_v39 }
  0xe6   : > { %v719_v40 = vpop.f32.mrf.mxu0  ;;  %v759_v41 = vpop.f32.mrf.mxu1 }
  0xe8   : > { %v408_v42 = vpop.f32.mrf.mxu0  ;;  %v488_v43 = vpop.f32.mrf.mxu1 }
  0xe9   : > { %546 = vst.msk [vmem:[%s951_s23 + $0x28] sm:$0xff] %vm540_vm2, %v408_v42  ;;  %566 = vst.msk [vmem:[%s951_s23 + $0xc8] sm:$0xff] %vm540_vm2, %v488_v43 }
  0xea   : > { %v720_v44 = vpop.f32.mrf.mxu0  ;;  %v760_v45 = vpop.f32.mrf.mxu1 }
  0xec   : > { %v413_v46 = vpop.f32.mrf.mxu0  ;;  %v493_v47 = vpop.f32.mrf.mxu1 }
  0xed   : > { %547 = vst.msk [vmem:[%s951_s23 + $0x30] sm:$0xff] %vm540_vm2, %v413_v46  ;;  %567 = vst.msk [vmem:[%s951_s23 + $0xd0] sm:$0xff] %vm540_vm2, %v493_v47 }
  0xee   : > { %v723_v48 = vpop.f32.mrf.mxu0  ;;  %v763_v49 = vpop.f32.mrf.mxu1 }
  0xf0   : > { %v416_v50 = vpop.f32.mrf.mxu0  ;;  %v496_v51 = vpop.f32.mrf.mxu1 }
  0xf1   : > { %548 = vst.msk [vmem:[%s951_s23 + $0x38] sm:$0xff] %vm540_vm2, %v416_v50  ;;  %568 = vst.msk [vmem:[%s951_s23 + $0xd8] sm:$0xff] %vm540_vm2, %v496_v51 }
  0xf2   : > { %v724_v52 = vpop.f32.mrf.mxu0  ;;  %v764_v53 = vpop.f32.mrf.mxu1 }
  0xf4   : > { %v421_v54 = vpop.f32.mrf.mxu0  ;;  %v501_v55 = vpop.f32.mrf.mxu1 }
  0xf5   : > { %549 = vst.msk [vmem:[%s951_s23 + $0x40] sm:$0xff] %vm540_vm2, %v421_v54  ;;  %569 = vst.msk [vmem:[%s951_s23 + $0xe0] sm:$0xff] %vm540_vm2, %v501_v55 }
  0xf6   : > { %v727_v56 = vpop.f32.mrf.mxu0  ;;  %v767_v57 = vpop.f32.mrf.mxu1 }
  0xf8   : > { %v424_v58 = vpop.f32.mrf.mxu0  ;;  %v504_v59 = vpop.f32.mrf.mxu1 }
  0xf9   : > { %550 = vst.msk [vmem:[%s951_s23 + $0x48] sm:$0xff] %vm540_vm2, %v424_v58  ;;  %570 = vst.msk [vmem:[%s951_s23 + $0xe8] sm:$0xff] %vm540_vm2, %v504_v59 }
  0xfa   : > { %v728_v60 = vpop.f32.mrf.mxu0  ;;  %v768_v61 = vpop.f32.mrf.mxu1 }
  0xfc   : > { %v429_v62 = vpop.f32.mrf.mxu0  ;;  %v509_v63 = vpop.f32.mrf.mxu1 }
  0xfd   : > { %551 = vst.msk [vmem:[%s951_s23 + $0x50] sm:$0xff] %vm540_vm2, %v429_v62  ;;  %571 = vst.msk [vmem:[%s951_s23 + $0xf0] sm:$0xff] %vm540_vm2, %v509_v63 }
  0xfe   : > { %v731_v0 = vpop.f32.mrf.mxu0  ;;  %v771_v1 = vpop.f32.mrf.mxu1 }
 0x100   : > { %v432_v2 = vpop.f32.mrf.mxu0  ;;  %v512_v3 = vpop.f32.mrf.mxu1 }
 0x101   : > { %552 = vst.msk [vmem:[%s951_s23 + $0x58] sm:$0xff] %vm540_vm2, %v432_v2  ;;  %572 = vst.msk [vmem:[%s951_s23 + $0xf8] sm:$0xff] %vm540_vm2, %v512_v3 }
 0x102   : > { %v732_v4 = vpop.f32.mrf.mxu0  ;;  %v772_v5 = vpop.f32.mrf.mxu1 }
 0x104   : > { %v437_v6 = vpop.f32.mrf.mxu0  ;;  %v517_v7 = vpop.f32.mrf.mxu1 }
 0x105   : > { %553 = vst.msk [vmem:[%s951_s23 + $0x60] sm:$0xff] %vm540_vm2, %v437_v6  ;;  %573 = vst.msk [vmem:[%s951_s23 + $0x100] sm:$0xff] %vm540_vm2, %v517_v7 }
 0x106   : > { %v735_v8 = vpop.f32.mrf.mxu0  ;;  %v775_v9 = vpop.f32.mrf.mxu1 }
 0x108   : > { %v440_v10 = vpop.f32.mrf.mxu0  ;;  %v520_v11 = vpop.f32.mrf.mxu1 }
 0x109   : > { %554 = vst.msk [vmem:[%s951_s23 + $0x68] sm:$0xff] %vm540_vm2, %v440_v10  ;;  %574 = vst.msk [vmem:[%s951_s23 + $0x108] sm:$0xff] %vm540_vm2, %v520_v11 }
 0x10a   : > { %v736_v12 = vpop.f32.mrf.mxu0  ;;  %v776_v13 = vpop.f32.mrf.mxu1 }
 0x10c   : > { %v445_v14 = vpop.f32.mrf.mxu0  ;;  %v525_v15 = vpop.f32.mrf.mxu1 }
 0x10d   : > { %555 = vst.msk [vmem:[%s951_s23 + $0x70] sm:$0xff] %vm540_vm2, %v445_v14  ;;  %575 = vst.msk [vmem:[%s951_s23 + $0x110] sm:$0xff] %vm540_vm2, %v525_v15 }
 0x10e   : > { %v739_v16 = vpop.f32.mrf.mxu0  ;;  %v779_v17 = vpop.f32.mrf.mxu1 }
 0x110   : > { %v448_v18 = vpop.f32.mrf.mxu0  ;;  %v528_v19 = vpop.f32.mrf.mxu1 }
 0x111   : > { %556 = vst.msk [vmem:[%s951_s23 + $0x78] sm:$0xff] %vm540_vm2, %v448_v18  ;;  %576 = vst.msk [vmem:[%s951_s23 + $0x118] sm:$0xff] %vm540_vm2, %v528_v19 }
 0x112   : > { %v740_v20 = vpop.f32.mrf.mxu0  ;;  %v780_v21 = vpop.f32.mrf.mxu1 }
 0x114   : > { %v453_v22 = vpop.f32.mrf.mxu0  ;;  %v533_v23 = vpop.f32.mrf.mxu1 }
 0x115   : > { %557 = vst.msk [vmem:[%s951_s23 + $0x80] sm:$0xff] %vm540_vm2, %v453_v22  ;;  %577 = vst.msk [vmem:[%s951_s23 + $0x120] sm:$0xff] %vm540_vm2, %v533_v23 }
 0x116   : > { %v743_v24 = vpop.f32.mrf.mxu0  ;;  %v783_v25 = vpop.f32.mrf.mxu1 }
 0x118   : > { %v456_v26 = vpop.f32.mrf.mxu0  ;;  %v536_v27 = vpop.f32.mrf.mxu1 }
 0x119   : > { %558 = vst.msk [vmem:[%s951_s23 + $0x88] sm:$0xff] %vm540_vm2, %v456_v26  ;;  %578 = vst.msk [vmem:[%s951_s23 + $0x128] sm:$0xff] %vm540_vm2, %v536_v27 }
 0x11a   : > { %v744_v28 = vpop.f32.mrf.mxu0  ;;  %v784_v29 = vpop.f32.mrf.mxu1 }
 0x11c   : > { %v461_v30 = vpop.f32.mrf.mxu0 }
 0x11d   : > { %559 = vst.msk [vmem:[%s951_s23 + $0x90] sm:$0xff] %vm540_vm2, %v461_v30 }
 0x11e   : > { %v747_v31 = vpop.f32.mrf.mxu0 }
 0x120   : > { %v464_v32 = vpop.f32.mrf.mxu0 }
 0x121   : > { %560 = vst.msk [vmem:[%s951_s23 + $0x98] sm:$0xff] %vm540_vm2, %v464_v32 }
 0x122   : > { %v748_v33 = vpop.f32.mrf.mxu0 }
 0x123 PF: > { %s12_s9 = sadd.s32 1, %s826_s9  }
 0x124   : > { %p9_p4 = scmp.ge.s32.totalorder %s12_s9, 4  }
 0x126   :  { %11 = sbr.rel (!%p9_p4) target bundleno = 1 (0x1), region = 58 }

// kernel: forward.3
= control target key start
LH: loop header
LB: loop body
LE: loop exit
PB: predicated region body
PF: predicated region fallthrough
CT: control target
= control target key end

     0   :  { %s898_s15 = smov 0   ;;  %s900_s16 = smov 0   ;;  %s1052_s0 = inlined_call_operand.vmem [shape: bf16[19,19], index: 0, kind: input, shape index: {}]   ;;  %s1053_s1 = inlined_call_operand.vmem [shape: bf16[104,256], index: 1, kind: input, shape index: {}]   ;;  %s1054_s2 = inlined_call_operand.vmem [shape: bf16[2,19,512], index: 2, kind: input, shape index: {}]   ;;  %s1055_s3 = inlined_call_operand.vmem [shape: bf16[2,2,19,104], index: 3, kind: input, shape index: {}]   ;;  %s1056_s4 = inlined_call_operand.vmem [shape: f32[2,19,512], index: 4, kind: output, shape index: {}]  }
   0x1   :  { %s902_s17 = smov 0   ;;  %s904_s18 = smov 0  }
   0x2   :  { %s906_s19 = smov 0   ;;  %s908_s20 = smov 0  }
   0x3   :  { %s910_s21 = smov 0  }
   0x4 LB: > { %s23_s22 = sadd.s32 1, %s861_s19  ;;  %s26_s23 = sadd.s32 1, %s865_s20  ;;  %s869_s21 = sphi %s910_s21, %s14_s21   ;;  %s865_s20 = sphi %s908_s20, %s1063_s20   ;;  %s861_s19 = sphi %s906_s19, %s1062_s19   ;;  %s857_s18 = sphi %s904_s18, %s1061_s18   ;;  %s853_s17 = sphi %s902_s17, %s1060_s17   ;;  %s849_s16 = sphi %s900_s16, %s1059_s16   ;;  %s845_s15 = sphi %s898_s15, %s1058_s15  }
   0x5   : > { %p24_p0 = scmp.ge.s32.totalorder %s23_s22, 2  ;;  %s682_s24 = sadd.s32 4294967295, %s869_s21  }
   0x6   : > { %p84_p1 = scmp.ne.s32.totalorder %s849_s16, %s845_s15  ;;  %p85_p2 = scmp.eq.s32.totalorder %s869_s21, 0 }
   0x7   : > { %s1065_s22 = smov (%p24_p0, %s23_s22), 0  ;;  %s1067_s23 = smov (!%p24_p0, %s26_s23), %s865_s20 }
   0x8   : > { %p28_p3 = scmp.ge.s32.totalorder %s1067_s23, 2  ;;  %p144_p4 = scmp.eq.s32.totalorder %s682_s24, 3 }
   0x9   : > { %s73_s25 = ssub.s32 %s861_s19, %s1065_s22  ;;  %p86_p5 = por %p85_p2, %p84_p1 }
   0xa   : > { %s1069_s23 = smov (%p28_p3, %s1067_s23), 0  ;;  %p946_p6 = por %p144_p4, %p84_p1 }
   0xb   : > { %s72_s27 = ssub.s32 %s865_s20, %s1069_s23  ;;  %s77_s29 = sadd.s32 1, %s849_s16 }
   0xc   : > { %s74_s28 = sor.u32 %s73_s25, %s72_s27  ;;  %p685_p8 = scmp.ge.s32.totalorder %s869_s21, 4 }
   0xd   : > { %p75_p7 = scmp.eq.s32.totalorder %s74_s28, 0 }
   0xe   : > { %172 = sbr.rel (%p685_p8) target bundleno = 29 (0x1d), region = 24 }
   0xf   : > { %s954_s30 = scalar_select %p75_p7, %s849_s16, %s77_s29  }
  0x13   : > { %175 = sbr.rel (!%p86_p5) target bundleno = 29 (0x1d), region = 28  ;;  %s177_s5 = sand.u32 (%p86_p5), 1, %s849_s16  }
  0x14   : > { %s721_s6 = smul.u32 (%p86_p5), 24, %s177_s5  ;;  %s686_s7 = sshll.u32 (%p86_p5), %s861_s19, 1 }
  0x15   : > { %s722_s8 = smul.u32 (%p86_p5), 12, %s865_s20 }
  0x16   : > { %s179_s14 = scalar_lea.vmem (%p86_p5), [#allocation2], %s721_s6 }
  0x17   : > { %s182_s9 = sadd.s32 (%p86_p5), %s722_s8, %s686_s7 }
  0x18   : > { %s687_s10 = sshll.u32 %s182_s9, 2 }
  0x19   : > { %s184_s13 = scalar_lea.vmem %s1054_s2, %s687_s10 }
  0x1a   : > { %v217_v0 = vld [vmem:[%s184_s13] sm:$0xff]  ;;  %v219_v1 = vld [vmem:[%s184_s13 + $0x10] sm:$0xff] }
  0x1b   : > { %v221_v2 = vld [vmem:[%s184_s13 + $0x20] sm:$0xff]  ;;  %218 = vst [vmem:[%s179_s14] sm:$0xff] %v217_v0  ;;  %220 = vst [vmem:[%s179_s14 + $0x8] sm:$0xff] %v219_v1 }
  0x1c   : > { %222 = vst [vmem:[%s179_s14 + $0x10] sm:$0xff] %v221_v2 }
  0x1d PF: > { %p688_p9 = scmp.ge.s32.totalorder %s869_s21, 1  ;;  %p239_p10 = scmp.lt.s32.totalorder %s869_s21, 5 }
  0x1f   : > { %p240_p11 = pnand %p688_p9, %p239_p10 }
  0x20   : > { %s246_s27 = sand.u32 (!%p240_p11), 1, %s845_s15   ;;  %p280_p12 = scmp.lt.s32.totalorder (!%p240_p11), %s857_s18, 1 }
  0x21   : > { %243 = sbr.rel (%p240_p11) target bundleno = 283 (0x11b), region = 70  ;;  %p282_p13 = scmp.lt.s32.totalorder (!%p240_p11), %s853_s17, 1 }
  0x22   : > { %s723_s5 = smul.u32 (!%p240_p11), 24, %s246_s27 }
  0x24   : > { %s248_s8 = scalar_lea.vmem (!%p240_p11), [#allocation2], %s723_s5 }
  0x26   : > { %v312_v3 = vld [vmem:[%s1053_s1 + $0x60] sm:$0xff]  ;;  %vm393_vm0 = vcmask 1043456   ;;  %v788_v6 = vld [vmem:[%s1053_s1 + $0x54] ss:$8 sps:$4 sm:$0xff]   ;;  %vm481_vm1 = vcmask 1040384   ;;  %vm482_vm2 = vcmask 1041408  }
  0x27   : > { %v705_v4 = vcombine.high %v312_v3, %v312_v3  ;;  %v704_v5 = vcombine.low %v312_v3, %v312_v3  ;;  %v790_v8 = vld [vmem:[%s1053_s1 + $0x50] ss:$8 sps:$4 sm:$0xff]   ;;  %v791_v10 = vld [vmem:[%s1053_s1 + $0x44] ss:$8 sps:$4 sm:$0xff]   ;;  %v871_v13 = vmov 65535   ;;  %v872_v15 = vmov 0  }
  0x28   : > { %v296_v9 = vld [vmem:[%s248_s8 + $0x10] sm:$0x33]  ;;  %v483_v14 = vsel %vm481_vm1, 4294967295, %v871_v13  ;;  %523 = vmatprep.mubr.bf16.mxu1 %v872_v15  ;;  %432 = vmatprep.mubr.bf16.mxu0 %v872_v15  ;;  %v802_v21 = vld [vmem:[%s248_s8 + $0x4] ss:$8 sps:$4 sm:$0xff]   ;;  %s281_s24 = scalar_select %p280_p12, %s857_s18, 1 }
  0x29   : > { %706 = vmatprep.subr.msk.bf16.mxu0 %vm393_vm0, %v705_v4  ;;  %v395_v7 = vsel %vm393_vm0, %v704_v5, 0  ;;  %v714_v11 = vcombine.high %v296_v9, %v296_v9  ;;  %v713_v12 = vcombine.low %v296_v9, %v296_v9  ;;  %v793_v16 = vld [vmem:[%s1053_s1 + $0x40] ss:$8 sps:$4 sm:$0xff]   ;;  %v484_v17 = vsel %vm482_vm2, %v483_v14, 0  ;;  %v794_v18 = vld [vmem:[%s1053_s1 + $0x34] ss:$8 sps:$4 sm:$0xff]  }
  0x2a   : > { %403 = vmatpush1.bf16.msra.mxu0 %v395_v7  ;;  %v804_v22 = vld [vmem:[%s248_s8] ss:$8 sps:$4 sm:$0xff]   ;;  %s283_s25 = scalar_select %p282_p13, %s853_s17, 1  ;;  %v799_v24 = vld [vmem:[%s1053_s1 + $0x24] ss:$8 sps:$4 sm:$0xff]   ;;  %vm474_vm3 = vcmask 154624  }
  0x2b   : > { %404 = vmatprep.subr.bf16.mxu0 %v788_v6  ;;  %v489_v19 = vand.u32 %v714_v11, %v484_v17  ;;  %v486_v20 = vand.u32 %v713_v12, %v484_v17  ;;  %v796_v23 = vld [vmem:[%s1053_s1 + $0x30] ss:$8 sps:$4 sm:$0xff]   ;;  %s726_s5 = smul.u32 6, %s281_s24  ;;  %v808_v25 = vld [vmem:[%s1052_s0] sm:$0xff]   ;;  %v805_v27 = vld [vmem:[%s1053_s1 + $0x14] ss:$8 sps:$4 sm:$0xff]  }
  0x2c   : > { %s725_s9 = smul.u32 3, %s283_s25  ;;  %v801_v26 = vld [vmem:[%s1053_s1 + $0x20] ss:$8 sps:$4 sm:$0xff]   ;;  %v807_v28 = vld [vmem:[%s1053_s1 + $0x10] ss:$8 sps:$4 sm:$0xff]   ;;  %vm386_vm4 = vcmask 850944  }
  0x2d   : > { %503 = vmatprep.subr.bf16.mxu1 %v489_v19  ;;  %v809_v29 = vld [vmem:[%s1053_s1 + $0x4] ss:$8 sps:$4 sm:$0xff]   ;;  %v813_v30 = vld [vmem:[%s1052_s0 + $0x8] ss:$0 sps:$4 sm:$0x33]   ;;  %s717_s15 = sshll.u32 (%p946_p6), %s853_s17, 1 }
  0x2e   : > { %405 = vmatpush1.bf16.msra.mxu0 %v790_v8  ;;  %504 = vmatpush1.bf16.msra.mxu1 %v486_v20  ;;  %s286_s8 = sadd.s32 %s726_s5, %s725_s9  ;;  %v811_v31 = vld [vmem:[%s1053_s1] ss:$8 sps:$4 sm:$0xff]  }
  0x2f   : > { %406 = vmatprep.subr.bf16.mxu0 %v791_v10  ;;  %505 = vmatprep.subr.bf16.mxu1 %v802_v21  ;;  %s689_s14 = sshll.u32 %s286_s8, 2 }
  0x30   : > { %s288_s6 = scalar_lea.vmem %s1055_s3, %s689_s14  ;;  %s724_s14 = smul.u32 48, %s246_s27 }
  0x31   : > { %v812_v32 = vld [vmem:[%s288_s6] sm:$0xff]   ;;  %v814_v33 = vld [vmem:[%s288_s6 + $0x8] ss:$0 sps:$4 sm:$0x33]   ;;  %s727_s27 = smul.u32 (%p946_p6), 12, %s857_s18 }
  0x32   : > { %407 = vmatpush1.bf16.msra.mxu0 %v793_v16  ;;  %506 = vmatpush1.bf16.msra.mxu1 %v804_v22  ;;  %s278_s24 = scalar_lea.vmem [#allocation3], %s724_s14 }
  0x33   : > { %408 = vmatprep.subr.bf16.mxu0 %v794_v18  ;;  %s557_s28 = sadd.s32 (%p946_p6), %s727_s27, %s717_s15 }
  0x34   : > { %s718_s29 = sshll.u32 (%p946_p6), %s557_s28, 3 }
  0x35   : > { %715 = vmatmul.mubr.msk.bf16.vlgmr.msra.gmra.mxu1 %vm474_vm3, %v808_v25  ;;  %s559_s5 = scalar_lea.vmem (%p946_p6), %s1056_s4, %s718_s29 }
  0x36   : > { %409 = vmatpush1.bf16.msra.mxu0 %v796_v23  ;;  %533 = vmatprep.mubr.bf16.mxu1 %v872_v15 }
  0x37   : > { %410 = vmatprep.subr.bf16.mxu0 %v799_v24 }
  0x3a   : > { %411 = vmatpush1.bf16.msra.mxu0 %v801_v26 }
  0x3b   : > { %412 = vmatprep.subr.bf16.mxu0 %v805_v27 }
  0x3d   : > { %716 = vmatmul.mubr.msk.bf16.gmra.mxu1 %vm474_vm3, %v813_v30 }
  0x3e   : > { %413 = vmatpush1.bf16.msra.mxu0 %v807_v28 }
  0x3f   : > { %414 = vmatprep.subr.bf16.mxu0 %v809_v29 }
  0x42   : > { %415 = vmatpush1.bf16.msra.mxu0 %v811_v31 }
  0x45   : > { %707 = vmatmul.mubr.msk.bf16.vlgmr.msra.gmra.mxu0 %vm386_vm4, %v812_v32 }
  0x46   : > { %442 = vmatprep.mubr.bf16.mxu0 %v872_v15 }
  0x4d   : > { %708 = vmatmul.mubr.msk.bf16.gmra.mxu0 %vm386_vm4, %v814_v33 }
  0xf5   : > { %v525_v34 = vpop.f32.mrf.mxu1 }
  0xf7   : > { %v527_v35 = vpop.f32.mrf.mxu1 }
  0xf9   : > { %v529_v36 = vpop.f32.mrf.mxu1 }
  0xfb   : > { %v531_v37 = vpop.f32.mrf.mxu1 }
  0xfd   : > { %v535_v38 = vpop.f32.mrf.mxu1 }
  0xff   : > { %v537_v39 = vpop.f32.mrf.mxu1 }
 0x101   : > { %v539_v40 = vpop.f32.mrf.mxu1 }
 0x103   : > { %v540_v43 = vpop.f32.mrf.mxu1 }
 0x105   : > { %v434_v41 = vpop.f32.mrf.mxu0 }
 0x106   : > { %v526_v42 = vadd.f32 %v525_v34, %v434_v41 }
 0x107   : > { %v436_v44 = vpop.f32.mrf.mxu0 }
 0x108   : > { %542 = vst [vmem:[%s278_s24] sm:$0xff] %v526_v42  ;;  %v528_v45 = vadd.f32 %v527_v35, %v436_v44 }
 0x109   : > { %v438_v46 = vpop.f32.mrf.mxu0 }
 0x10a   : > { %543 = vst [vmem:[%s278_s24 + $0x8] sm:$0xff] %v528_v45  ;;  %v530_v47 = vadd.f32 %v529_v36, %v438_v46 }
 0x10b   : > { %v440_v48 = vpop.f32.mrf.mxu0 }
 0x10c   : > { %544 = vst [vmem:[%s278_s24 + $0x10] sm:$0xff] %v530_v47  ;;  %v532_v49 = vadd.f32 %v531_v37, %v440_v48 }
 0x10d   : > { %v444_v50 = vpop.f32.mrf.mxu0 }
 0x10e   : > { %545 = vst [vmem:[%s278_s24 + $0x18] sm:$0xff] %v532_v49  ;;  %v536_v51 = vadd.f32 %v535_v38, %v444_v50 }
 0x10f   : > { %v446_v52 = vpop.f32.mrf.mxu0  ;;  %554 = sbr.rel (!%p946_p6) target bundleno = 283 (0x11b), region = 78  ;;  %v572_v56 = vld [vmem:[%s278_s24] sm:$0xff] (%p946_p6) }
 0x110   : > { %546 = vst [vmem:[%s278_s24 + $0x20] sm:$0x7] %v536_v51  ;;  %v538_v53 = vadd.f32 %v537_v39, %v446_v52  ;;  %573 = vst [vmem:[%s559_s5] sm:$0xff] (%p946_p6), %v572_v56 }
 0x111   : > { %v448_v54 = vpop.f32.mrf.mxu0  ;;  %v574_v57 = vld [vmem:[%s278_s24 + $0x8] sm:$0xff] (%p946_p6) }
 0x112   : > { %547 = vst [vmem:[%s278_s24 + $0x28] sm:$0x7] %v538_v53  ;;  %575 = vst [vmem:[%s559_s5 + $0x8] sm:$0xff] (%p946_p6), %v574_v57 }
 0x113   : > { %v449_v55 = vpop.f32.mrf.mxu0  ;;  %v576_v58 = vld [vmem:[%s278_s24 + $0x10] sm:$0xff] (%p946_p6) }
 0x114   : > { %577 = vst [vmem:[%s559_s5 + $0x20] sm:$0xff] %v576_v58 }
 0x115   : > { %v578_v59 = vld [vmem:[%s278_s24 + $0x18] sm:$0xff] }
 0x116   : > { %579 = vst [vmem:[%s559_s5 + $0x28] sm:$0xff] %v578_v59 }
 0x117   : > { %v580_v60 = vld [vmem:[%s278_s24 + $0x20] sm:$0xff] }
 0x118   : > { %581 = vst [vmem:[%s559_s5 + $0x40] sm:$0xff] %v580_v60 }
 0x119   : > { %v582_v61 = vld [vmem:[%s278_s24 + $0x28] sm:$0xff] }
 0x11a   : > { %583 = vst [vmem:[%s559_s5 + $0x48] sm:$0xff] %v582_v61 }
 0x11b PF: > { %s14_s21 = sadd.s32 1, %s869_s21   ;;  %s1058_s15 = smov %s849_s16 }
 0x11c   : > { %p11_p0 = scmp.ge.s32.totalorder %s14_s21, 6   ;;  %s1059_s16 = smov %s954_s30 }
 0x11d   : > { %s1060_s17 = smov %s861_s19  ;;  %s1061_s18 = smov %s865_s20 }
 0x11e   : > { %s1062_s19 = smov %s1065_s22  ;;  %s1063_s20 = smov %s1069_s23 }
 0x11f   :  { %13 = sbr.rel (!%p11_p0) target bundleno = 4 (0x4), region = 135 }

</bundles_post_ra>
